<compile_context>
chip_gen: v6e
topology: v6e:2x2x1
jax: 0.10.0
libtpu: 0.0.40
codegen_flags: <defaults>
</compile_context>

<pallas_src>
import jax
import jax.numpy as jnp
from jax.experimental import pallas as pl
from jax.experimental.pallas import tpu as pltpu

_NEG_INF = float("-inf")


def _masked_max_kernel(x_ref, m_ref, o_ref, acc_ref):
    """Running masked max over the sequence (reduction) grid axis."""
    l = pl.program_id(1)

    @pl.when(l == 0)
    def _():
        acc_ref[...] = jnp.full(acc_ref.shape, _NEG_INF, acc_ref.dtype)

    xv = x_ref[...]                                    # (TB, TL, D)
    keep = m_ref[...] > 0.5                            # (TB, TL, 1 or D)
    masked = jnp.where(keep, xv.astype(jnp.float32), _NEG_INF)
    acc_ref[...] = jnp.maximum(acc_ref[...], jnp.max(masked, axis=1))

    @pl.when(l == pl.num_programs(1) - 1)
    def _():
        o_ref[...] = acc_ref[...].astype(o_ref.dtype)


def _pick_tile(dim: int, target: int) -> int:
    """Largest divisor of `dim` that is <= target and a multiple of 8.

    Falls back to the full dim (always a legal, exact block extent), so the
    grid never has a ragged remainder and padded garbage can never pollute
    the max reduction.
    """
    if dim <= target:
        return dim
    for cand in range(target, 7, -1):
        if cand % 8 == 0 and dim % cand == 0:
            return cand
    return dim


def sequence_max_pool(x: jnp.ndarray, x_mask: jnp.ndarray) -> jnp.ndarray:
    """x: (B, L, D); x_mask: (B, L), (B, L, 1) or (B, L, D) bool -> (B, D)."""
    B, L, D = x.shape
    if x_mask.ndim == 2:
        x_mask = x_mask[..., None]
    assert x_mask.shape[:2] == (B, L) and x_mask.shape[2] in (1, D)
    m = x_mask.astype(jnp.float32)                     # 1.0 = keep, 0.0 = masked
    W = m.shape[2]

    # Batch axis is the parallel axis (split across TensorCores on v7x); the
    # sequence axis is the reduction and is last in the grid. Hidden D stays
    # whole as the lane axis. Tiles divide their dims exactly and stay small
    # enough that double-buffered blocks fit well inside v7x's 64 MiB VMEM.
    tb = _pick_tile(B, 64)
    tl = _pick_tile(L, 512)
    grid = (pl.cdiv(B, tb), pl.cdiv(L, tl))

    return pl.pallas_call(
        _masked_max_kernel,
        out_shape=jax.ShapeDtypeStruct((B, D), x.dtype),
        grid_spec=pltpu.PrefetchScalarGridSpec(
            num_scalar_prefetch=0,
            grid=grid,
            in_specs=[
                pl.BlockSpec((tb, tl, D), lambda b, l: (b, l, 0)),   # x tile
                pl.BlockSpec((tb, tl, W), lambda b, l: (b, l, 0)),   # mask tile
            ],
            out_specs=pl.BlockSpec((tb, D), lambda b, l: (b, 0)),    # resident over l
            scratch_shapes=[pltpu.VMEM((tb, D), jnp.float32)],       # running max
        ),
        compiler_params=pltpu.CompilerParams(
            dimension_semantics=("parallel", "arbitrary"),
            vmem_limit_bytes=48 * 1024 * 1024,
        ),
        cost_estimate=pl.CostEstimate(
            flops=B * L * D,                            # one compare/max per element
            transcendentals=0,
            bytes_accessed=(B * L * D + B * L * W + B * D) * 4,
        ),
    )(x, m)


if __name__ == "__main__":
    # Small shapes consistent with the module: batch=2, seq=8, hidden=32.
    B, L, D = 2, 8, 32
    key = jax.random.PRNGKey(0)
    x = jax.random.normal(key, (B, L, D), dtype=jnp.float32)

    # Deterministic per-token mask: sequence lengths 5 and 8.
    lengths = jnp.array([5, 8], dtype=jnp.int32)
    x_mask = (jnp.arange(L)[None, :] < lengths[:, None])[..., None]   # (B, L, 1) bool

    out = jax.block_until_ready(sequence_max_pool(x, x_mask))

    # Reference: same semantics as torch masked_fill(~mask, -inf) + max(dim=-2).
    ref = jnp.max(jnp.where(x_mask, x, -jnp.inf), axis=-2)
    assert out.shape == (B, D)
    assert jnp.allclose(out, ref, atol=1e-6, rtol=1e-6)

    print("KERNEL_OK")
</pallas_src>

<mosaic_0001>
module attributes {stable_mosaic.version = 11 : i64} {
  func.func @_masked_max_kernel(%arg0: i32, %arg1: i32, %arg2: memref<2x8x32xf32, #tpu.memory_space<vmem>>, %arg3: memref<2x8x1xf32, #tpu.memory_space<vmem>>, %arg4: memref<2x32xf32, #tpu.memory_space<vmem>>, %arg5: memref<2x32xf32, #tpu.memory_space<vmem>>) attributes {dimension_semantics = [#tpu.dimension_semantics<parallel>, #tpu.dimension_semantics<arbitrary>], iteration_bounds = array<i64: 1, 1>, scalar_prefetch = 0 : i64, scratch_operands = 1 : i64, tpu.core_type = #tpu.core_type<tc>, window_params = [{transform_indices = @transform_0, window_bounds = array<i64: 2, 8, 32>}, {transform_indices = @transform_1, window_bounds = array<i64: 2, 8, 1>}, {transform_indices = @transform_2, window_bounds = array<i64: 2, 32>}]} {
    %c0_i32 = arith.constant 0 : i32
    %0 = arith.cmpi eq, %arg1, %c0_i32 : i32
    %1 = arith.extui %0 : i1 to i32
    %c0_i32_0 = arith.constant 0 : i32
    %2 = arith.cmpi ne, %1, %c0_i32_0 : i32
    scf.if %2 {
      %cst_14 = arith.constant 0xFF800000 : f32
      %18 = vector.broadcast %cst_14 : f32 to vector<2x32xf32>
      %c0_15 = arith.constant 0 : index
      %c0_16 = arith.constant 0 : index
      %19 = vector.load %arg5[%c0_15, %c0_16] : memref<2x32xf32, #tpu.memory_space<vmem>>, vector<2x32xf32>
      tpu.vector_store %arg5[%c0_15, %c0_16], %18 {strides = array<i32>} : memref<2x32xf32, #tpu.memory_space<vmem>>, vector<2x32xf32>,
    } else {
    }
    %c0 = arith.constant 0 : index
    %c0_1 = arith.constant 0 : index
    %c0_2 = arith.constant 0 : index
    %3 = vector.load %arg2[%c0, %c0_1, %c0_2] : memref<2x8x32xf32, #tpu.memory_space<vmem>>, vector<2x8x32xf32>
    %c0_3 = arith.constant 0 : index
    %c0_4 = arith.constant 0 : index
    %c0_5 = arith.constant 0 : index
    %4 = vector.load %arg3[%c0_3, %c0_4, %c0_5] : memref<2x8x1xf32, #tpu.memory_space<vmem>>, vector<2x8x1xf32>
    %cst = arith.constant 5.000000e-01 : f32
    %5 = vector.broadcast %cst : f32 to vector<2x8x1xf32>
    %6 = arith.cmpf ogt, %4, %5 : vector<2x8x1xf32>
    %cst_6 = arith.constant 0xFF800000 : f32
    %7 = vector.shape_cast %6 : vector<2x8x1xi1> to vector<2x8x1xi1>
    %8 = vector.broadcast %7 : vector<2x8x1xi1> to vector<2x8x32xi1>
    %9 = vector.broadcast %cst_6 : f32 to vector<2x8x32xf32>
    %10 = arith.select %8, %3, %9 : vector<2x8x32xi1>, vector<2x8x32xf32>
    %c0_7 = arith.constant 0 : index
    %c0_8 = arith.constant 0 : index
    %11 = vector.load %arg5[%c0_7, %c0_8] : memref<2x32xf32, #tpu.memory_space<vmem>>, vector<2x32xf32>
    %cst_9 = arith.constant dense<0xFF800000> : vector<2x32xf32>
    %12 = vector.multi_reduction <maximumf>, %10, %cst_9 [1] : vector<2x8x32xf32> to vector<2x32xf32>
    %13 = arith.maximumf %11, %12 : vector<2x32xf32>
    %c0_10 = arith.constant 0 : index
    %c0_11 = arith.constant 0 : index
    %14 = vector.load %arg5[%c0_10, %c0_11] : memref<2x32xf32, #tpu.memory_space<vmem>>, vector<2x32xf32>
    tpu.vector_store %arg5[%c0_10, %c0_11], %13 {strides = array<i32>} : memref<2x32xf32, #tpu.memory_space<vmem>>, vector<2x32xf32>,
    %c0_i32_12 = arith.constant 0 : i32
    %15 = arith.cmpi eq, %arg1, %c0_i32_12 : i32
    %16 = arith.extui %15 : i1 to i32
    %c0_i32_13 = arith.constant 0 : i32
    %17 = arith.cmpi ne, %16, %c0_i32_13 : i32
    scf.if %17 {
      %c0_14 = arith.constant 0 : index
      %c0_15 = arith.constant 0 : index
      %18 = vector.load %arg5[%c0_14, %c0_15] : memref<2x32xf32, #tpu.memory_space<vmem>>, vector<2x32xf32>
      %c0_16 = arith.constant 0 : index
      %c0_17 = arith.constant 0 : index
      %19 = vector.load %arg4[%c0_16, %c0_17] : memref<2x32xf32, #tpu.memory_space<vmem>>, vector<2x32xf32>
      tpu.vector_store %arg4[%c0_16, %c0_17], %18 {strides = array<i32>} : memref<2x32xf32, #tpu.memory_space<vmem>>, vector<2x32xf32>,
    } else {
    }
    return
  }
  func.func @transform_0(%arg0: i32, %arg1: i32) -> (i32, i32, i32) {
    %c0_i32 = arith.constant 0 : i32
    %c0_i32_0 = arith.constant 0 : i32
    return %arg0, %arg1, %c0_i32 : i32, i32, i32
  }
  func.func @transform_1(%arg0: i32, %arg1: i32) -> (i32, i32, i32) {
    %c0_i32 = arith.constant 0 : i32
    %c0_i32_0 = arith.constant 0 : i32
    return %arg0, %arg1, %c0_i32 : i32, i32, i32
  }
  func.func @transform_2(%arg0: i32, %arg1: i32) -> (i32, i32) {
    %c0_i32 = arith.constant 0 : i32
    %c0_i32_0 = arith.constant 0 : i32
    return %arg0, %c0_i32 : i32, i32
  }
}

</mosaic_0001>

<bundles_post_ra>
// kernel: tpu_custom_call.1
= control target key start
LH: loop header
LB: loop body
LE: loop exit
PB: predicated region body
PF: predicated region fallthrough
CT: control target
= control target key end

     0   :  { %v105_v2 = vmov 0   ;;  %s141_s0 = inlined_call_operand.vmem [shape: f32[2,8,32], index: 0, kind: input, shape index: {}]   ;;  %s142_s1 = inlined_call_operand.vmem [shape: f32[2,8,1], index: 1, kind: input, shape index: {}]   ;;  %s143_s2 = inlined_call_operand.hbm [shape: f32[2,32], index: 2, kind: output, shape index: {}]  }
   0x1   :  { %v20_v0 = vld [vmem:[%s142_s1] sm:$0xff]  ;;  %v21_v1 = vld [vmem:[%s142_s1 + $0x8] sm:$0xff]  ;;  %82 = vset.pattern.permute.xlu0 %v105_v2 }
   0x2   :  { %vm22_vm0 = vcmp.gt.f32.partialorder %v20_v0, 0.5  ;;  %vm23_vm1 = vcmp.gt.f32.partialorder %v21_v1, 0.5 }
   0x3   :  { %7 = vsyncpa [#allocation4], 0  ;;  %v24_v3 = vsel %vm22_vm0, 1, %v105_v2  ;;  %v25_v4 = vsel %vm23_vm1, 1, %v105_v2  ;;  %vm16_vm2 = vcmask 254976   ;;  %v106_v5 = vmov -inf  }
   0x4   :  { %27 = vperm.xlu0 %82, %v24_v3   ;;  %17 = vst.msk [vmem:[#allocation2] sm:$0x3] %vm16_vm2, %v106_v5  ;;  %v18_v6 = vld [vmem:[%s141_s0] sm:$0xff]  ;;  %vm37_vm3 = vcmask 261120   ;;  %v19_v10 = vld [vmem:[%s141_s0 + $0x8] sm:$0xff]  ;;  %vm54_vm6 = vcmask 1041409  }
   0x5   :  { %s107_s0 = smov [#allocation3]  }
   0x6   :  { %s71_s16 = sshll.u32 %s107_s0, 4  ;;  %s72_s16 = int_to_ptr.vmem [resolvable:$true] %s71_s16 }
   0x7   :  { %s83_s17 = scalar_lea.vmem %s72_s16, 32  ;;  %p88_p1 = scmp.lt.s32.totalorder %s72_s16, %s72_s16 }
   0x8   :  { %30 = vperm.xlu0 %82, %v25_v4   ;;  %p84_p0 = scmp.ne.s32.totalorder %s72_s16, %s83_s17  ;;  %p89_p2 = scmp.lt.s32.totalorder %s83_s17, %s83_s17 }
   0xa   :  { %p90_p3 = por %p89_p2, %p88_p1 }
   0xb   :  { %v36_v26 = vld [vmem:[#allocation2] sm:$0x3] }
   0xc   :  { %p91_p4 = pnand %p90_p3, %p84_p0 }
  0x7f   :  { %v28_v7 = vpop.permute.xlu0 %27 }
  0x80   :  { %vm32_vm4 = vcmp.eq.s32.totalorder %v28_v7, 1 }
  0x81   :  { %v34_v8 = vsel %vm32_vm4, %v18_v6, -inf }
  0x82   :  { %v38_v9 = vsel %vm37_vm3, %v34_v8, -inf }
  0x83   :  { %v39_v11 = vrot.slane %v38_v9, 4  ;;  %v31_v12 = vpop.permute.xlu0 %30 }
  0x84   :  { %vm33_vm5 = vcmp.eq.s32.totalorder %v31_v12, 1 }
  0x85   :  { %v40_v13 = vmax.f32 %v38_v9, %v39_v11  ;;  %v35_v14 = vsel %vm33_vm5, %v19_v10, -inf }
  0x86   :  { %v45_v15 = vsel %vm37_vm3, %v35_v14, -inf }
  0x87   :  { %v41_v16 = vrot.slane %v40_v13, 2  ;;  %v46_v17 = vrot.slane %v45_v15, 4 }
  0x89   :  { %v42_v18 = vmax.f32 %v40_v13, %v41_v16  ;;  %v47_v19 = vmax.f32 %v45_v15, %v46_v17 }
  0x8b   :  { %v48_v20 = vrot.slane %v47_v19, 2  ;;  %v43_v21 = vrot.slane %v42_v18, 1 }
  0x8d   :  { %v49_v22 = vmax.f32 %v47_v19, %v48_v20  ;;  %v44_v24 = vmax.f32 %v42_v18, %v43_v21 }
  0x8f   :  { %v50_v23 = vrot.slane %v49_v22, 1 }
  0x91   :  { %v51_v25 = vmax.f32 %v49_v22, %v50_v23 }
  0x93   :  { %v55_v27 = vsel %vm54_vm6, %v51_v25, %v44_v24 }
  0x94   :  { %v57_v28 = vmax.f32 %v36_v26, %v55_v27 }
  0x96   :  { %59 = vst.msk [vmem:[#allocation2] sm:$0x3] %vm16_vm2, %v57_v28 }
  0x9d   :  { %v63_v29 = vld [vmem:[#allocation2] sm:$0x3] }
  0x9e   :  { %64 = vst.msk [vmem:[#allocation3] sm:$0x3] %vm16_vm2, %v63_v29 }
  0x9f   :  { %94 = shalt.err (!%p91_p4)
}
  0xa0   :  { %74 = dma.vmem_to_hbm [thread:$0]  %s72_s16, 32, %s143_s2, [#allocation4]  }
  0xa1   :  { %103 = dma.done.wait [#allocation4], 32  }
  0xa2   :  { %104 = vsyncadd [#allocation4], 4294967264 }
  0xa3   :  { %78 = vsyncpa [#allocation4], 1 }

</bundles_post_ra>
